<compile_context>
chip_gen: v5e
topology: v5e:2x2
jax: 0.10.0
libtpu: 0.0.40
codegen_flags: <defaults>
</compile_context>

<pallas_src>
import functools

import jax
import jax.numpy as jnp
import numpy as np
from jax.experimental import pallas as pl
from jax.experimental.pallas import tpu as pltpu

ALPHA, BETA, GAMMA = 0.3, 0.7, 0.75
_LANES = 128


def _ftl_kernel(p_ref, t_ref, o_ref, *, rows, tr, n_blocks, bps,
                ragged, single_step):
    """Accumulate packed per-(n, c) partial statistics.

    p_ref : (1, C,  tr, 128)  probs block (native dtype)
    t_ref : (1, Ct, tr, 128)  target block, Ct == C or 1 (shared channel)
    o_ref : (1, 4,  C, 128)   packed per-lane partials, revisited across the
                              sequential spatial grid axis:
                                row 0: sum(p * t_raw)   row 1: sum(p)
                                row 2: sum(t_raw)       row 3: max(t_raw, 0)
    """
    pi = pl.program_id(1)            # parallel spatial split
    si = pl.program_id(2)            # sequential spatial step within the split
    blk = pi * bps + si              # global spatial block index

    def _stats(mask_tail):
        p = p_ref[0].astype(jnp.float32)        # (C,  tr, 128)
        t = t_ref[0].astype(jnp.float32)        # (Ct, tr, 128)
        if mask_tail:
            # Rows past the true spatial extent hold unspecified pad data:
            # zero them.  Zero is exact for the sums; for the running max it
            # only matters against the `> 1.0` scale test, which zero cannot
            # flip, so it is safe there too (targets are {0,1} or {0,255}).
            row = jax.lax.broadcasted_iota(jnp.int32, (p.shape[1], _LANES), 0)
            keep = (row + blk * tr) < rows
            p = jnp.where(keep[None, :, :], p, 0.0)
            t = jnp.where(keep[None, :, :], t, 0.0)
        p_s = jnp.sum(p, axis=1)                                # (C, 128)
        pt_s = jnp.sum(p * t, axis=1)                           # (C, 128)
        t_s = jnp.broadcast_to(jnp.sum(t, axis=1), p_s.shape)   # (C, 128)
        t_m = jnp.broadcast_to(jnp.max(t, axis=1), p_s.shape)   # (C, 128)
        return pt_s, p_s, t_s, t_m

    def _store(vals):
        pt_s, p_s, t_s, t_m = vals
        o_ref[0, 0] = pt_s
        o_ref[0, 1] = p_s
        o_ref[0, 2] = t_s
        o_ref[0, 3] = t_m

    def _accum(vals):
        pt_s, p_s, t_s, t_m = vals
        o_ref[0, 0] += pt_s
        o_ref[0, 1] += p_s
        o_ref[0, 2] += t_s
        o_ref[0, 3] = jnp.maximum(o_ref[0, 3], t_m)

    if single_step:
        # Exactly one spatial block per (n, split): store directly — no
        # accumulator init and no read-modify-write.
        if ragged:
            @pl.when(blk == n_blocks - 1)
            def _():
                _store(_stats(True))

            @pl.when(blk < n_blocks - 1)
            def _():
                _store(_stats(False))
        else:
            _store(_stats(False))
    else:
        @pl.when(si == 0)
        def _():
            o_ref[...] = jnp.zeros_like(o_ref)

        if ragged:
            @pl.when(blk == n_blocks - 1)
            def _():
                _accum(_stats(True))

            @pl.when(blk < n_blocks - 1)
            def _():
                _accum(_stats(False))
        else:
            # blk can exceed n_blocks - 1 only via the parallel-split
            # overhang; such steps contribute nothing.
            @pl.when(blk < n_blocks)
            def _():
                _accum(_stats(False))


def focal_tversky_loss(probs, target, a=ALPHA, b=BETA, g=GAMMA,
                       block_budget_bytes=6 * 1024 * 1024):
    n, c, h, w = probs.shape
    hw = h * w

    # ---- view the spatial dim as (rows, 128): pure reshape when H*W is a
    #      multiple of 128, otherwise a one-time zero pad (neutral) ---------
    hw_pad = pl.cdiv(hw, _LANES) * _LANES
    rows = hw_pad // _LANES

    p_flat = probs.reshape(n, c, hw)
    if target.ndim == 3:
        t_flat = target.reshape(n, 1, hw)          # shared channel, never
    else:                                          # materialized C-fold in HBM
        t_flat = target.reshape(n, target.shape[1], hw)
    ct = t_flat.shape[1]
    assert ct in (1, c)

    if hw_pad != hw:
        pad = ((0, 0), (0, 0), (0, hw_pad - hw))
        p_flat = jnp.pad(p_flat, pad)
        t_flat = jnp.pad(t_flat, pad)
    p4 = p_flat.reshape(n, c, rows, _LANES)
    t4 = t_flat.reshape(n, ct, rows, _LANES)

    # ---- tile selection (HBM-bound: big, sublane-dense blocks) -----------
    p_item = probs.dtype.itemsize
    t_item = target.dtype.itemsize
    tr_cap = max(8, (block_budget_bytes // (c * _LANES * p_item)) // 8 * 8)
    tr = rows if rows <= tr_cap else tr_cap
    if n == 1 and rows >= 16 and pl.cdiv(rows, tr) == 1:
        # v7x megacore: guarantee >= 2 "parallel" grid blocks when N == 1 by
        # splitting the spatial range into two halves.
        tr = (pl.cdiv(rows, 2) + 7) // 8 * 8
    n_blocks = pl.cdiv(rows, tr)
    p_split = 2 if (n == 1 and n_blocks >= 2) else 1
    bps = pl.cdiv(n_blocks, p_split)               # spatial blocks per split
    n_s = bps
    ragged = (tr < rows) and (rows % tr != 0)
    single_step = (n_s == 1)

    def _blk(pi, si):                              # clamp split overhang
        return jnp.minimum(pi * bps + si, n_blocks - 1)

    p_spec = pl.BlockSpec((1, c, tr, _LANES),
                          lambda ni, pi, si: (ni, 0, _blk(pi, si), 0))
    t_spec = pl.BlockSpec((1, ct, tr, _LANES),
                          lambda ni, pi, si: (ni, 0, _blk(pi, si), 0))
    o_spec = pl.BlockSpec((1, 4, c, _LANES),
                          lambda ni, pi, si: (ni * p_split + pi, 0, 0, 0))
    out_sds = jax.ShapeDtypeStruct((n * p_split, 4, c, _LANES), jnp.float32)

    p_block_bytes = c * tr * _LANES * p_item
    t_block_bytes = ct * tr * _LANES * t_item
    vmem_limit = int(min(100 * 2**20,
                         max(48 * 2**20,
                             2 * (p_block_bytes + t_block_bytes) + (4 << 20))))

    kernel = functools.partial(_ftl_kernel, rows=rows, tr=tr,
                               n_blocks=n_blocks, bps=bps,
                               ragged=ragged, single_step=single_step)
    stats = pl.pallas_call(
        kernel,
        out_shape=out_sds,
        grid_spec=pltpu.PrefetchScalarGridSpec(
            num_scalar_prefetch=0,
            grid=(n, p_split, n_s),
            in_specs=[p_spec, t_spec],
            out_specs=o_spec),
        compiler_params=pltpu.CompilerParams(
            dimension_semantics=("parallel", "parallel", "arbitrary"),
            vmem_limit_bytes=vmem_limit),
    )(p4, t4)

    # ---- tiny (N, C)-sized epilogue in plain JAX -------------------------
    stats = stats.reshape(n, p_split, 4, c, _LANES)
    tp = stats[:, :, 0].sum(axis=(1, 3))       # sum(p * t_raw)       (N, C)
    sp = stats[:, :, 1].sum(axis=(1, 3))       # sum(p)
    st = stats[:, :, 2].sum(axis=(1, 3))       # sum(t_raw)
    t_max = stats[:, :, 3].max()               # max(t_raw, 0): only vs 1.0
    scale = jnp.where(t_max > 1.0, jnp.float32(1.0 / 255.0), jnp.float32(1.0))
    tp = tp * scale                            # sums with the scaled target
    st = st * scale
    fp = jnp.maximum(sp - tp, 0.0)             # sum((1 - t) * p) >= 0
    fn = jnp.maximum(st - tp, 0.0)             # sum(t * (1 - p)) >= 0
    tv = (tp + 1.0) / (tp + a * fp + b * fn + 1.0)
    return jnp.mean((1.0 - tv) ** g)


def _reference(probs, target, a=ALPHA, b=BETA, g=GAMMA):
    # Pure-JAX port of the PyTorch module for verification.
    probs = probs.astype(jnp.float32)
    target = target.astype(jnp.float32)
    if float(jnp.max(target)) > 1:
        target = target / 255.0
    if target.ndim == 3:
        target = target[:, None, :, :]
    tp = jnp.sum(probs * target, axis=(2, 3))
    fp = jnp.sum((1.0 - target) * probs, axis=(2, 3))
    fn = jnp.sum(target * (1.0 - probs), axis=(2, 3))
    tv = (tp + 1.0) / (tp + a * fp + b * fn + 1.0)
    return jnp.mean((1.0 - tv) ** g)


if __name__ == "__main__":
    key = jax.random.PRNGKey(0)
    kp, k1, k2, k3, k4, kp3, kp4 = jax.random.split(key, 7)

    # Case 1: (N, C, H, W) {0,1} target, same shape as probs.
    N, C, H, W = 2, 4, 16, 16
    probs = jax.nn.sigmoid(jax.random.normal(kp, (N, C, H, W), jnp.float32))
    target4 = jax.random.bernoulli(k1, 0.4, (N, C, H, W)).astype(jnp.float32)
    out = focal_tversky_loss(probs, target4)
    jax.block_until_ready(out)
    np.testing.assert_allclose(np.asarray(out),
                               np.asarray(_reference(probs, target4)),
                               rtol=1e-5, atol=1e-5)

    # Case 2: (N, H, W) {0, 255} mask — shared-channel target + /255 scaling.
    target3 = jax.random.bernoulli(k2, 0.3, (N, H, W)).astype(jnp.float32) * 255.0
    out = focal_tversky_loss(probs, target3)
    jax.block_until_ready(out)
    np.testing.assert_allclose(np.asarray(out),
                               np.asarray(_reference(probs, target3)),
                               rtol=1e-5, atol=1e-5)

    # Case 3: N=1 with a tiny block budget — exercises the parallel spatial
    # split (megacore), multi-step accumulation, the ragged-tail mask and the
    # split-overhang skip.
    probs3 = jax.nn.sigmoid(jax.random.normal(kp3, (1, 3, 72, 64), jnp.float32))
    tgt3 = jax.random.bernoulli(k3, 0.5, (1, 72, 64)).astype(jnp.float32)
    out = focal_tversky_loss(probs3, tgt3, block_budget_bytes=8 * 1024)
    jax.block_until_ready(out)
    np.testing.assert_allclose(np.asarray(out),
                               np.asarray(_reference(probs3, tgt3)),
                               rtol=1e-5, atol=1e-5)

    # Case 4: C=1 binary segmentation with H*W not a multiple of 128 —
    # exercises the one-time zero-pad path.
    probs4 = jax.nn.sigmoid(jax.random.normal(kp4, (2, 1, 12, 20), jnp.float32))
    tgt4 = jax.random.bernoulli(k4, 0.5, (2, 1, 12, 20)).astype(jnp.float32)
    out = focal_tversky_loss(probs4, tgt4)
    jax.block_until_ready(out)
    np.testing.assert_allclose(np.asarray(out),
                               np.asarray(_reference(probs4, tgt4)),
                               rtol=1e-5, atol=1e-5)

    print("KERNEL_OK")
</pallas_src>

<mosaic_0001>
module attributes {stable_mosaic.version = 11 : i64} {
  func.func @_ftl_kernel(%arg0: i32, %arg1: i32, %arg2: i32, %arg3: memref<1x4x2x128xf32, #tpu.memory_space<vmem>>, %arg4: memref<1x4x2x128xf32, #tpu.memory_space<vmem>>, %arg5: memref<1x4x4x128xf32, #tpu.memory_space<vmem>>) attributes {dimension_semantics = [#tpu.dimension_semantics<parallel>, #tpu.dimension_semantics<parallel>, #tpu.dimension_semantics<arbitrary>], iteration_bounds = array<i64: 2, 1, 1>, scalar_prefetch = 0 : i64, scratch_operands = 0 : i64, tpu.core_type = #tpu.core_type<tc>, window_params = [{transform_indices = @transform_0, window_bounds = array<i64: 1, 4, 2, 128>}, {transform_indices = @transform_1, window_bounds = array<i64: 1, 4, 2, 128>}, {transform_indices = @transform_2, window_bounds = array<i64: 1, 4, 4, 128>}]} {
    %c0 = arith.constant 0 : index
    %c0_0 = arith.constant 0 : index
    %c0_1 = arith.constant 0 : index
    %c0_2 = arith.constant 0 : index
    %0 = vector.load %arg3[%c0, %c0_0, %c0_1, %c0_2] : memref<1x4x2x128xf32, #tpu.memory_space<vmem>>, vector<1x4x2x128xf32>
    %1 = vector.shape_cast %0 : vector<1x4x2x128xf32> to vector<4x2x128xf32>
    %c0_3 = arith.constant 0 : index
    %c0_4 = arith.constant 0 : index
    %c0_5 = arith.constant 0 : index
    %c0_6 = arith.constant 0 : index
    %2 = vector.load %arg4[%c0_3, %c0_4, %c0_5, %c0_6] : memref<1x4x2x128xf32, #tpu.memory_space<vmem>>, vector<1x4x2x128xf32>
    %3 = vector.shape_cast %2 : vector<1x4x2x128xf32> to vector<4x2x128xf32>
    %cst = arith.constant dense<0.000000e+00> : vector<4x128xf32>
    %4 = vector.multi_reduction <add>, %1, %cst [1] : vector<4x2x128xf32> to vector<4x128xf32>
    %5 = arith.mulf %1, %3 : vector<4x2x128xf32>
    %cst_7 = arith.constant dense<0.000000e+00> : vector<4x128xf32>
    %6 = vector.multi_reduction <add>, %5, %cst_7 [1] : vector<4x2x128xf32> to vector<4x128xf32>
    %cst_8 = arith.constant dense<0.000000e+00> : vector<4x128xf32>
    %7 = vector.multi_reduction <add>, %3, %cst_8 [1] : vector<4x2x128xf32> to vector<4x128xf32>
    %cst_9 = arith.constant dense<0xFF800000> : vector<4x128xf32>
    %8 = vector.multi_reduction <maximumf>, %3, %cst_9 [1] : vector<4x2x128xf32> to vector<4x128xf32>
    %c0_10 = arith.constant 0 : index
    %c0_11 = arith.constant 0 : index
    %c0_12 = arith.constant 0 : index
    %c0_13 = arith.constant 0 : index
    %9 = vector.load %arg5[%c0_10, %c0_11, %c0_12, %c0_13] : memref<1x4x4x128xf32, #tpu.memory_space<vmem>>, vector<1x1x4x128xf32>
    %10 = vector.shape_cast %9 : vector<1x1x4x128xf32> to vector<4x128xf32>
    %11 = vector.shape_cast %6 : vector<4x128xf32> to vector<1x1x4x128xf32>
    tpu.vector_store %arg5[%c0_10, %c0_11, %c0_12, %c0_13], %11 {strides = array<i32>} : memref<1x4x4x128xf32, #tpu.memory_space<vmem>>, vector<1x1x4x128xf32>,
    %c0_14 = arith.constant 0 : index
    %c1 = arith.constant 1 : index
    %c0_15 = arith.constant 0 : index
    %c0_16 = arith.constant 0 : index
    %12 = vector.load %arg5[%c0_14, %c1, %c0_15, %c0_16] : memref<1x4x4x128xf32, #tpu.memory_space<vmem>>, vector<1x1x4x128xf32>
    %13 = vector.shape_cast %12 : vector<1x1x4x128xf32> to vector<4x128xf32>
    %14 = vector.shape_cast %4 : vector<4x128xf32> to vector<1x1x4x128xf32>
    tpu.vector_store %arg5[%c0_14, %c1, %c0_15, %c0_16], %14 {strides = array<i32>} : memref<1x4x4x128xf32, #tpu.memory_space<vmem>>, vector<1x1x4x128xf32>,
    %c0_17 = arith.constant 0 : index
    %c2 = arith.constant 2 : index
    %c0_18 = arith.constant 0 : index
    %c0_19 = arith.constant 0 : index
    %15 = vector.load %arg5[%c0_17, %c2, %c0_18, %c0_19] : memref<1x4x4x128xf32, #tpu.memory_space<vmem>>, vector<1x1x4x128xf32>
    %16 = vector.shape_cast %15 : vector<1x1x4x128xf32> to vector<4x128xf32>
    %17 = vector.shape_cast %7 : vector<4x128xf32> to vector<1x1x4x128xf32>
    tpu.vector_store %arg5[%c0_17, %c2, %c0_18, %c0_19], %17 {strides = array<i32>} : memref<1x4x4x128xf32, #tpu.memory_space<vmem>>, vector<1x1x4x128xf32>,
    %c0_20 = arith.constant 0 : index
    %c3 = arith.constant 3 : index
    %c0_21 = arith.constant 0 : index
    %c0_22 = arith.constant 0 : index
    %18 = vector.load %arg5[%c0_20, %c3, %c0_21, %c0_22] : memref<1x4x4x128xf32, #tpu.memory_space<vmem>>, vector<1x1x4x128xf32>
    %19 = vector.shape_cast %18 : vector<1x1x4x128xf32> to vector<4x128xf32>
    %20 = vector.shape_cast %8 : vector<4x128xf32> to vector<1x1x4x128xf32>
    tpu.vector_store %arg5[%c0_20, %c3, %c0_21, %c0_22], %20 {strides = array<i32>} : memref<1x4x4x128xf32, #tpu.memory_space<vmem>>, vector<1x1x4x128xf32>,
    return
  }
  func.func @transform_0(%arg0: i32, %arg1: i32, %arg2: i32) -> (i32, i32, i32, i32) {
    %c1_i32 = arith.constant 1 : i32
    %0 = arith.muli %arg1, %c1_i32 : i32
    %1 = arith.addi %0, %arg2 : i32
    %c0_i32 = arith.constant 0 : i32
    %2 = arith.minsi %1, %c0_i32 : i32
    %c0_i32_0 = arith.constant 0 : i32
    %c0_i32_1 = arith.constant 0 : i32
    %c0_i32_2 = arith.constant 0 : i32
    return %arg0, %c0_i32_0, %2, %c0_i32_1 : i32, i32, i32, i32
  }
  func.func @transform_1(%arg0: i32, %arg1: i32, %arg2: i32) -> (i32, i32, i32, i32) {
    %c1_i32 = arith.constant 1 : i32
    %0 = arith.muli %arg1, %c1_i32 : i32
    %1 = arith.addi %0, %arg2 : i32
    %c0_i32 = arith.constant 0 : i32
    %2 = arith.minsi %1, %c0_i32 : i32
    %c0_i32_0 = arith.constant 0 : i32
    %c0_i32_1 = arith.constant 0 : i32
    %c0_i32_2 = arith.constant 0 : i32
    return %arg0, %c0_i32_0, %2, %c0_i32_1 : i32, i32, i32, i32
  }
  func.func @transform_2(%arg0: i32, %arg1: i32, %arg2: i32) -> (i32, i32, i32, i32) {
    %c1_i32 = arith.constant 1 : i32
    %0 = arith.muli %arg0, %c1_i32 : i32
    %1 = arith.addi %0, %arg1 : i32
    %c0_i32 = arith.constant 0 : i32
    %c0_i32_0 = arith.constant 0 : i32
    %c0_i32_1 = arith.constant 0 : i32
    %c0_i32_2 = arith.constant 0 : i32
    return %1, %c0_i32, %c0_i32_0, %c0_i32_1 : i32, i32, i32, i32
  }
}

</mosaic_0001>

<bundles_post_ra>
// kernel: tpu_custom_call.1
= control target key start
LH: loop header
LB: loop body
LE: loop exit
PB: predicated region body
PF: predicated region fallthrough
CT: control target
= control target key end

     0   :  { %7 = vsyncpa [#allocation3], 0  ;;  %s1011_s0 = inlined_call_operand.hbm [shape: f32[2,4,2,128], index: 0, kind: input, shape index: {}]   ;;  %s1012_s1 = inlined_call_operand.hbm [shape: f32[2,4,2,128], index: 1, kind: input, shape index: {}]   ;;  %s1013_s2 = inlined_call_operand.hbm [shape: f32[2,4,4,128], index: 2, kind: output, shape index: {}]  }
   0x1   :  { %9 = vsyncpa [#allocation3 + $0x1], 0 }
   0x2   :  { %10 = vsyncpa [#allocation6], 0 }
   0x3   :  { %12 = vsyncpa [#allocation6 + $0x1], 0 }
   0x4   :  { %13 = vsyncpa [#allocation4], 0 }
   0x5   :  { %15 = vsyncpa [#allocation4 + $0x1], 0  ;;  %s814_s9 = smov 0   ;;  %s816_s10 = smov 0  }
   0x6   :  { %s818_s11 = smov 0   ;;  %s820_s12 = smov 0  }
   0x7   :  { %s822_s13 = smov 0   ;;  %s824_s14 = smov 0  }
   0x8 LB: > { %s551_s15 = sadd.s32 4294967295, %s793_s14   ;;  %s552_s16 = sadd.s32 4294967294, %s793_s14   ;;  %s793_s14 = sphi %s824_s14, %s21_s14   ;;  %s789_s13 = sphi %s822_s13, %s1023_s13   ;;  %s785_s12 = sphi %s820_s12, %s1022_s12   ;;  %s781_s11 = sphi %s818_s11, %s1021_s11   ;;  %s777_s10 = sphi %s816_s10, %s1020_s10   ;;  %s773_s9 = sphi %s814_s9, %s1019_s9  }
   0x9   : > { %s40_s17 = sadd.s32 1, %s789_s13  ;;  %s55_s18 = sadd.s32 1, %s781_s11 }
   0xa   : > { %p42_p0 = scmp.ge.s32.totalorder %s40_s17, 2  ;;  %p62_p1 = scmp.ne.s32.totalorder %s781_s11, %s777_s10 }
   0xb   : > { %p63_p2 = scmp.eq.s32.totalorder %s793_s14, 0  ;;  %p68_p3 = scmp.ne.s32.totalorder %s777_s10, %s773_s9 }
   0xc   : > { %s1025_s17 = smov (%p42_p0, %s40_s17), 0  ;;  %p69_p5 = scmp.eq.s32.totalorder %s551_s15, 0 }
   0xd   : > { %p855_p4 = por %p63_p2, %p62_p1  ;;  %s50_s20 = ssub.s32 %s789_s13, %s1025_s17 }
   0xe   : > { %p128_p6 = scmp.eq.s32.totalorder %s551_s15, 1  ;;  %p53_p7 = scmp.eq.s32.totalorder %s50_s20, 0 }
   0xf   : > { %p861_p8 = por %p69_p5, %p68_p3  ;;  %p134_p10 = scmp.eq.s32.totalorder %s552_s16, 1 }
  0x10   : > { %p865_p9 = por %p128_p6, %p62_p1  ;;  %p554_p12 = scmp.ge.s32.totalorder %s793_s14, 2 }
  0x11   : > { %s870_s23 = scalar_select %p53_p7, %s781_s11, %s55_s18  }
  0x12   : > { %p872_p11 = por %p134_p10, %p68_p3  ;;  %p593_p13 = scmp.lt.s32.totalorder %s793_s14, 2 }
  0x13   : > { %s879_s25 = sand.u32 1, %s781_s11   ;;  %s573_s27 = sshll.u32 %s789_s13, 3 }
  0x14   : > { %s555_s26 = sshll.u32 %s879_s25, 3  ;;  %s167_s30 = scalar_lea.hbm %s1011_s0, %s573_s27 }
  0x15   : > { %s158_s3 = scalar_lea.vmem [#allocation2], %s555_s26  ;;  %s168_s5 = sshll.u32 %s167_s30, 4  ;;  %s169_s5 = int_to_ptr.hbm [resolvable:$true] %s168_s5 }
  0x16   : > { %s170_s4 = sshll.u32 %s158_s3, 4  ;;  %p888_p0 = pnand %p593_p13, %p855_p4  ;;  %s171_s4 = int_to_ptr.vmem [resolvable:$true] %s170_s4 }
  0x17   : > { %p561_p1 = scmp.ge.s32.totalorder %s793_s14, 1  ;;  %s155_s7 = scalar_lea.sflag [#allocation3], %s879_s25 }
  0x18   : > { %s795_s8 = smov 32   ;;  %s796_s15 = smov 2  }
  0x19   : > { %585 = dma.hbm_to_vmem [thread:$0]  (!%p888_p0), %s169_s5, 128, %s171_s4, %s155_s7, %s795_s8, %s795_s8, %s796_s15  }
  0x1a   : > { %p204_p2 = scmp.lt.s32.totalorder %s793_s14, 3  ;;  %s193_s20 = scalar_lea.hbm %s1012_s1, %s573_s27 }
  0x1b   : > { %s194_s28 = sshll.u32 %s193_s20, 4  ;;  %s184_s19 = scalar_lea.vmem [#allocation5], %s555_s26  ;;  %s195_s28 = int_to_ptr.hbm [resolvable:$true] %s194_s28 }
  0x1c   : > { %p205_p3 = pnand %p561_p1, %p204_p2  ;;  %s196_s29 = sshll.u32 %s184_s19, 4  ;;  %s197_s29 = int_to_ptr.vmem [resolvable:$true] %s196_s29 }
  0x1d   : > { %s181_s30 = scalar_lea.sflag [#allocation6], %s879_s25  ;;  %s904_s3 = sand.u32 (!%p205_p3), 1, %s777_s10  }
  0x1e   : > { %588 = dma.hbm_to_vmem [thread:$0]  (!%p888_p0), %s195_s28, 128, %s197_s29, %s181_s30, %s795_s8, %s795_s8, %s796_s15  }
  0x1f   : > { %208 = sbr.rel (%p205_p3) target bundleno = 82 (0x52), region = 28  ;;  %s562_s4 = sshll.u32 (!%p205_p3), %s904_s3, 3 }
  0x20   : > { %s211_s5 = scalar_lea.sflag (!%p205_p3), [#allocation3], %s904_s3  ;;  %s214_s7 = scalar_lea.vmem (!%p205_p3), [#allocation2], %s562_s4 }
  0x24   : > { %760 = dma.done.wait (%p861_p8), %s211_s5, 128  }
  0x25   : > { %762 = vsyncadd (%p861_p8), %s211_s5, 4294967168  ;;  %s221_s25 = scalar_lea.sflag [#allocation6], %s904_s3  ;;  %s224_s26 = scalar_lea.vmem [#allocation5], %s562_s4 }
  0x26   : > { %764 = dma.done.wait (%p861_p8), %s221_s25, 128  }
  0x27   : > { %766 = vsyncadd (%p861_p8), %s221_s25, 4294967168  ;;  %vm266_vm0 = vcmask 1041408   ;;  %v258_v0 = vld [vmem:[%s214_s7] sm:$0x3]  ;;  %v259_v1 = vld [vmem:[%s214_s7 + $0x2] sm:$0x3] }
  0x28   : > { %v260_v2 = vld [vmem:[%s214_s7 + $0x4] sm:$0x3]  ;;  %v261_v3 = vld [vmem:[%s214_s7 + $0x6] sm:$0x3]  ;;  %v917_v4 = vld [vmem:[%s224_s26] sm:$0x3] }
  0x29   : > { %v919_v5 = vld [vmem:[%s224_s26 + $0x2] sm:$0x3]  ;;  %v921_v6 = vld [vmem:[%s224_s26 + $0x4] sm:$0x3]  ;;  %v923_v7 = vld [vmem:[%s224_s26 + $0x6] sm:$0x3]  ;;  %v295_v8 = vmul.f32 %v917_v4, %v258_v0 }
  0x2a   : > { %v296_v9 = vmul.f32 %v919_v5, %v259_v1  ;;  %v267_v10 = vsel %vm266_vm0, %v258_v0, 0.0  ;;  %v274_v11 = vsel %vm266_vm0, %v259_v1, 0.0  ;;  %v297_v12 = vmul.f32 %v921_v6, %v260_v2  ;;  %s564_s21 = sshll.u32 %s904_s3, 4  ;;  %s575_s6 = sshll.u32 %s785_s12, 4 }
  0x2b   : > { %v298_v13 = vmul.f32 %v923_v7, %v261_v3  ;;  %v268_v14 = vrot.slane %v267_v10, 4  ;;  %v275_v15 = vrot.slane %v274_v11, 4  ;;  %v299_v16 = vsel %vm266_vm0, %v295_v8, 0.0  ;;  %s951_s27 = scalar_lea.vmem [#allocation7], %s564_s21  ;;  %s438_s16 = scalar_lea.hbm %s1013_s2, %s575_s6 }
  0x2c   : > { %v306_v17 = vsel %vm266_vm0, %v296_v9, 0.0  ;;  %v281_v18 = vsel %vm266_vm0, %v260_v2, 0.0  ;;  %v288_v19 = vsel %vm266_vm0, %v261_v3, 0.0  ;;  %v300_v20 = vrot.slane %v299_v16, 4  ;;  %s439_s12 = sshll.u32 %s951_s27, 4  ;;  %s441_s18 = sshll.u32 %s438_s16, 4  ;;  %s440_s12 = int_to_ptr.vmem [resolvable:$true] %s439_s12  ;;  %s442_s18 = int_to_ptr.hbm [resolvable:$true] %s441_s18 }
  0x2d   : > { %v307_v21 = vrot.slane %v306_v17, 4  ;;  %v313_v22 = vsel %vm266_vm0, %v297_v12, 0.0  ;;  %v320_v23 = vsel %vm266_vm0, %v298_v13, 0.0  ;;  %vm387_vm1 = vcmask 1041409   ;;  %s426_s20 = scalar_lea.sflag [#allocation4], %s904_s3  ;;  %s721_s28 = sshra.s32 %s442_s18, 4  ;;  %s722_s28 = int_to_ptr.hbm [resolvable:$true] %s721_s28 }
  0x2e   : > { %v314_v24 = vrot.slane %v313_v22, 4  ;;  %v321_v25 = vrot.slane %v320_v23, 4  ;;  %v269_v26 = vadd.f32 %v268_v14, %v267_v10  ;;  %v276_v27 = vadd.f32 %v275_v15, %v274_v11  ;;  %s723_s19 = scalar_lea.hbm %s722_s28, 16  ;;  %s727_s4 = scalar_lea.hbm %s1013_s2, 32 }
  0x2f   : > { %v301_v28 = vadd.f32 %v300_v20, %v299_v16  ;;  %v308_v29 = vadd.f32 %v307_v21, %v306_v17  ;;  %vm389_vm2 = vcmask 1042434   ;;  %v282_v30 = vrot.slane %v281_v18, 4  ;;  %p724_p4 = scmp.ne.s32.totalorder %s722_s28, %s723_s19  ;;  %p728_p7 = scmp.lt.s32.totalorder %s722_s28, %s1013_s2 }
  0x30   : > { %v289_v31 = vrot.slane %v288_v19, 4  ;;  %v315_v32 = vadd.f32 %v314_v24, %v313_v22  ;;  %v322_v33 = vadd.f32 %v321_v25, %v320_v23  ;;  %vm391_vm3 = vcmask 1043459   ;;  %p729_p8 = scmp.lt.s32.totalorder %s727_s4, %s723_s19 }
  0x31   : > { %v270_v34 = vrot.slane %v269_v26, 2  ;;  %v277_v35 = vrot.slane %v276_v27, 2  ;;  %v302_v36 = vrot.slane %v301_v28, 2  ;;  %v309_v37 = vrot.slane %v308_v29, 2  ;;  %p725_p5 = pnand %p724_p4, %p865_p9 }
  0x32   : > { %v283_v38 = vadd.f32 %v282_v30, %v281_v18  ;;  %v290_v39 = vadd.f32 %v289_v31, %v288_v19  ;;  %v316_v40 = vrot.slane %v315_v32, 2  ;;  %v323_v41 = vrot.slane %v322_v33, 2  ;;  %p730_p10 = por %p729_p8, %p728_p7 }
  0x33   : > { %v271_v42 = vadd.f32 %v270_v34, %v269_v26  ;;  %v278_v43 = vadd.f32 %v277_v35, %v276_v27  ;;  %v303_v44 = vadd.f32 %v302_v36, %v301_v28  ;;  %v310_v45 = vadd.f32 %v309_v37, %v308_v29  ;;  %p726_p6 = pneg %p725_p5 }
  0x34   : > { %v284_v46 = vrot.slane %v283_v38, 2  ;;  %v291_v47 = vrot.slane %v290_v39, 2  ;;  %v317_v48 = vadd.f32 %v316_v40, %v315_v32  ;;  %v324_v49 = vadd.f32 %v323_v41, %v322_v33 }
  0x35   : > { %v272_v50 = vrot.slane %v271_v42, 1  ;;  %v279_v51 = vrot.slane %v278_v43, 1  ;;  %v304_v52 = vrot.slane %v303_v44, 1  ;;  %v311_v53 = vrot.slane %v310_v45, 1  ;;  %p731_p13 = pnand %p730_p10, %p726_p6 }
  0x36   : > { %v285_v54 = vadd.f32 %v284_v46, %v283_v38  ;;  %v292_v55 = vadd.f32 %v291_v47, %v290_v39  ;;  %v318_v56 = vrot.slane %v317_v48, 1  ;;  %v325_v57 = vrot.slane %v324_v49, 1 }
  0x37   : > { %v273_v58 = vadd.f32 %v272_v50, %v271_v42  ;;  %v280_v59 = vadd.f32 %v279_v51, %v278_v43  ;;  %v305_v60 = vadd.f32 %v304_v52, %v303_v44  ;;  %v312_v61 = vadd.f32 %v311_v53, %v310_v45 }
  0x38   : > { %v286_v62 = vrot.slane %v285_v54, 1  ;;  %v293_v63 = vrot.slane %v292_v55, 1  ;;  %v319_v0 = vadd.f32 %v318_v56, %v317_v48  ;;  %v326_v1 = vadd.f32 %v325_v57, %v324_v49 }
  0x39   : > { %v399_v2 = vsel %vm387_vm1, %v280_v59, %v273_v58  ;;  %v327_v3 = vsel %vm266_vm0, %v917_v4, 0.0  ;;  %v388_v8 = vsel %vm387_vm1, %v312_v61, %v305_v60  ;;  %v334_v13 = vsel %vm266_vm0, %v919_v5, 0.0 }
  0x3a   : > { %v287_v9 = vadd.f32 %v286_v62, %v285_v54  ;;  %v294_v10 = vadd.f32 %v293_v63, %v292_v55  ;;  %v328_v11 = vrot.slane %v327_v3, 4  ;;  %v390_v12 = vsel %vm389_vm2, %v319_v0, %v388_v8 }
  0x3b   : > { %v341_v14 = vsel %vm266_vm0, %v921_v6, 0.0  ;;  %v348_v15 = vsel %vm266_vm0, %v923_v7, 0.0  ;;  %v392_v16 = vsel %vm391_vm3, %v326_v1, %v390_v12  ;;  %v335_v19 = vrot.slane %v334_v13, 4 }
  0x3c   : > { %v400_v17 = vsel %vm389_vm2, %v287_v9, %v399_v2  ;;  %v329_v18 = vadd.f32 %v328_v11, %v327_v3  ;;  %394 = vst [vmem:[%s951_s27] sm:$0xf] %v392_v16  ;;  %v342_v21 = vrot.slane %v341_v14, 4  ;;  %v349_v22 = vrot.slane %v348_v15, 4 }
  0x3d   : > { %v401_v20 = vsel %vm391_vm3, %v294_v10, %v400_v17  ;;  %v355_v23 = vsel %vm266_vm0, %v917_v4, -inf  ;;  %v336_v25 = vadd.f32 %v335_v19, %v334_v13  ;;  %v362_v27 = vsel %vm266_vm0, %v919_v5, -inf }
  0x3e   : > { %565 = vst [vmem:[%s951_s27 + $0x4] sm:$0xf] %v401_v20  ;;  %v330_v24 = vrot.slane %v329_v18, 2  ;;  %v356_v26 = vrot.slane %v355_v23, 4  ;;  %v343_v28 = vadd.f32 %v342_v21, %v341_v14  ;;  %v350_v29 = vadd.f32 %v349_v22, %v348_v15 }
  0x3f   : > { %v363_v30 = vrot.slane %v362_v27, 4  ;;  %v369_v31 = vsel %vm266_vm0, %v921_v6, -inf  ;;  %v337_v33 = vrot.slane %v336_v25, 2  ;;  %v376_v38 = vsel %vm266_vm0, %v923_v7, -inf }
  0x40   : > { %v331_v32 = vadd.f32 %v330_v24, %v329_v18  ;;  %v357_v34 = vmax.f32 %v355_v23, %v356_v26  ;;  %v370_v35 = vrot.slane %v369_v31, 4  ;;  %v344_v36 = vrot.slane %v343_v28, 2 }
  0x41   : > { %v351_v37 = vrot.slane %v350_v29, 2  ;;  %v364_v4 = vmax.f32 %v362_v27, %v363_v30  ;;  %v338_v40 = vadd.f32 %v337_v33, %v336_v25  ;;  %v377_v45 = vrot.slane %v376_v38, 4 }
  0x42   : > { %v332_v39 = vrot.slane %v331_v32, 1  ;;  %v358_v5 = vrot.slane %v357_v34, 2  ;;  %v371_v41 = vmax.f32 %v369_v31, %v370_v35  ;;  %v345_v42 = vadd.f32 %v344_v36, %v343_v28 }
  0x43   : > { %v352_v43 = vadd.f32 %v351_v37, %v350_v29  ;;  %v365_v44 = vrot.slane %v364_v4, 2  ;;  %v339_v46 = vrot.slane %v338_v40, 1  ;;  %v378_v52 = vmax.f32 %v376_v38, %v377_v45 }
  0x44   : > { %v333_v6 = vadd.f32 %v332_v39, %v331_v32  ;;  %v359_v47 = vmax.f32 %v357_v34, %v358_v5  ;;  %v372_v48 = vrot.slane %v371_v41, 2  ;;  %v346_v49 = vrot.slane %v345_v42, 1 }
  0x45   : > { %v353_v50 = vrot.slane %v352_v43, 1  ;;  %v366_v51 = vmax.f32 %v364_v4, %v365_v44  ;;  %v340_v7 = vadd.f32 %v339_v46, %v338_v40  ;;  %v379_v58 = vrot.slane %v378_v52, 2 }
  0x46   : > { %v360_v53 = vrot.slane %v359_v47, 1  ;;  %v373_v54 = vmax.f32 %v371_v41, %v372_v48  ;;  %v347_v55 = vadd.f32 %v346_v49, %v345_v42 }
  0x47   : > { %v354_v56 = vadd.f32 %v353_v50, %v352_v43  ;;  %v367_v57 = vrot.slane %v366_v51, 1  ;;  %v409_v59 = vsel %vm387_vm1, %v340_v7, %v333_v6  ;;  %v380_v0 = vmax.f32 %v378_v52, %v379_v58 }
  0x48   : > { %v361_v60 = vmax.f32 %v359_v47, %v360_v53  ;;  %v374_v61 = vrot.slane %v373_v54, 1  ;;  %v410_v62 = vsel %vm389_vm2, %v347_v55, %v409_v59 }
  0x49   : > { %v368_v63 = vmax.f32 %v366_v51, %v367_v57  ;;  %v411_v1 = vsel %vm391_vm3, %v354_v56, %v410_v62  ;;  %v381_v3 = vrot.slane %v380_v0, 1 }
  0x4a   : > { %v375_v2 = vmax.f32 %v373_v54, %v374_v61  ;;  %566 = vst [vmem:[%s951_s27 + $0x8] sm:$0xf] %v411_v1 }
  0x4b   : > { %v419_v8 = vsel %vm387_vm1, %v368_v63, %v361_v60  ;;  %v382_v10 = vmax.f32 %v380_v0, %v381_v3 }
  0x4c   : > { %v420_v9 = vsel %vm389_vm2, %v375_v2, %v419_v8 }
  0x4d   : > { %v421_v11 = vsel %vm391_vm3, %v382_v10, %v420_v9 }
  0x4e   : > { %567 = vst [vmem:[%s951_s27 + $0xc] sm:$0xf] %v421_v11 }
  0x4f   : > { %734 = shalt.err (!%p731_p13)
}
  0x50   : > { %s797_s3 = smov 64   ;;  %s798_s25 = smov 4  }
  0x51   : > { %580 = dma.vmem_to_hbm [thread:$0]  (%p865_p9), %s440_s12, 256, %s442_s18, %s426_s20, %s797_s3, %s797_s3, %s798_s25  }
  0x52 PF: > { %s456_s26 = sand.u32 1, %s773_s9   ;;  %p590_p0 = pnand %p554_p12, %p872_p11 }
  0x53   : > { %s457_s21 = scalar_lea.sflag [#allocation4], %s456_s26 }
  0x54   : > { %p591_p1 = pneg %p590_p0 }
  0x56   : > { %768 = dma.done.wait (%p591_p1), %s457_s21, 256  }
  0x57   : > { %770 = vsyncadd (%p591_p1), %s457_s21, 4294967040  ;;  %s21_s14 = sadd.s32 1, %s793_s14   ;;  %s1019_s9 = smov %s777_s10 }
  0x58   : > { %p18_p2 = scmp.ge.s32.totalorder %s21_s14, 4   ;;  %s1020_s10 = smov %s781_s11 }
  0x59   : > { %s1021_s11 = smov %s870_s23  ;;  %s1022_s12 = smov %s789_s13 }
  0x5a   : > { %s1023_s13 = smov %s1025_s17  ;;  %20 = sbr.rel (!%p18_p2) target bundleno = 8 (0x8), region = 89 }
  0x5f   :  { %463 = vsyncpa [#allocation3], 1 }
  0x60   :  { %465 = vsyncpa [#allocation3 + $0x1], 1 }
  0x61   :  { %466 = vsyncpa [#allocation6], 1 }
  0x62   :  { %468 = vsyncpa [#allocation6 + $0x1], 1 }
  0x63   :  { %469 = vsyncpa [#allocation4], 1 }
  0x64   :  { %471 = vsyncpa [#allocation4 + $0x1], 1 }

</bundles_post_ra>
